<compile_context>
chip_gen: v5e
topology: v5e:2x2
jax: 0.10.0
libtpu: 0.0.40
codegen_flags: <defaults>
</compile_context>

<pallas_src>
import functools
import math

import jax
import jax.numpy as jnp
from jax.experimental import pallas as pl
from jax.experimental.pallas import tpu as pltpu


# ----------------------------- Pallas kernels ------------------------------ #

def _mm_kernel(a_ref, b_ref, t_ref, *rest, slope, has_residual):
    """o = act((a @ b) + shift [+ residual]).  Scale is pre-folded into b."""
    if has_residual:
        r_ref, o_ref = rest
    else:
        (o_ref,) = rest
    y = jnp.dot(a_ref[...], b_ref[...], preferred_element_type=jnp.float32)
    y = y + t_ref[...]
    if has_residual:
        y = y + r_ref[...]
    if slope is not None:          # 0.0 -> ReLU, >0 -> LeakyReLU, None -> linear
        y = jnp.where(y > 0, y, slope * y)
    o_ref[...] = y


def _detect_tensorcores_per_chip():
    """2 TensorCores only on v7x; v5e/v6e expose a single TC per device."""
    try:
        kind = jax.devices()[0].device_kind.lower()
        if '7' in kind:
            return 2
    except Exception:  # pragma: no cover - detection is best-effort only
        pass
    return 1


_NUM_TC = _detect_tensorcores_per_chip()
_SPLIT_MIN_WEIGHT_BYTES = 2 << 20   # only split a matmul across TCs if B >= 2 MiB


def fused_matmul(a, b, shift, residual=None, slope=None):
    """A:(M,K) @ B:(K,N) + per-column shift (+ residual, + activation).

    B is expected pre-packed bf16 with any BatchNorm scale / conv bias folded in.
    Whole-array VMEM blocks by default (everything here is far below VMEM);
    a 2-step "parallel" N split is used only on 2-TC chips for large weights."""
    M, K = a.shape
    K2, N = b.shape
    assert K == K2, (a.shape, b.shape)
    a = a.astype(jnp.bfloat16)
    b = b.astype(jnp.bfloat16)              # no-op when pre-packed
    shift = jnp.asarray(shift, jnp.float32).reshape(1, N)
    has_res = residual is not None
    operands = [a, b, shift]
    if has_res:
        operands.append(residual.astype(jnp.float32).reshape(M, N))
    kernel = functools.partial(_mm_kernel, slope=slope, has_residual=has_res)
    out_shape = jax.ShapeDtypeStruct((M, N), jnp.float32)

    if (_NUM_TC >= 2 and N % 256 == 0
            and K * N * 2 >= _SPLIT_MIN_WEIGHT_BYTES):
        # v7x megacore: exactly one block per TensorCore.
        nb = N // 2
        in_specs = [
            pl.BlockSpec((M, K), lambda j: (0, 0)),
            pl.BlockSpec((K, nb), lambda j: (0, j)),
            pl.BlockSpec((1, nb), lambda j: (0, j)),
        ]
        if has_res:
            in_specs.append(pl.BlockSpec((M, nb), lambda j: (0, j)))
        return pl.pallas_call(
            kernel,
            out_shape=out_shape,
            grid=(2,),
            in_specs=in_specs,
            out_specs=pl.BlockSpec((M, nb), lambda j: (0, j)),
            compiler_params=pltpu.CompilerParams(
                dimension_semantics=("parallel",)),
        )(*operands)

    return pl.pallas_call(
        kernel,
        out_shape=out_shape,
        in_specs=[pl.BlockSpec(memory_space=pltpu.MemorySpace.VMEM)] * len(operands),
        out_specs=pl.BlockSpec(memory_space=pltpu.MemorySpace.VMEM),
    )(*operands)


# ------------------------- weight packing (once, at init) ------------------- #

def _bn_affine(bn, eps=1e-5):
    """Eval-mode BatchNorm -> per-channel (scale, shift) from running stats."""
    scale = bn['gamma'] * jax.lax.rsqrt(bn['var'] + eps)
    shift = bn['beta'] - bn['mean'] * scale
    return scale, shift


def pack_conv(w, bias=None, bn=None):
    """Pack a PyTorch-layout conv weight (Cout,Cin,kh,kw) for the fused matmul.

    Returns (K,N) bf16 weight (+ center-tap (Cin,N) variant) with the eval-BN
    scale and conv bias folded in; shift stays f32."""
    Cout, Cin, kh, kw = w.shape
    if bn is not None:
        scale, shift = _bn_affine(bn)
    else:
        scale = jnp.ones((Cout,), jnp.float32)
        shift = jnp.zeros((Cout,), jnp.float32)
    if bias is not None:
        shift = shift + scale * bias
    w_full = (w.reshape(Cout, Cin * kh * kw).T * scale[None, :]).astype(jnp.bfloat16)
    w_center = (w[:, :, kh // 2, kw // 2].T * scale[None, :]).astype(jnp.bfloat16)
    return {'w_full': w_full, 'w_center': w_center,
            'shift': shift.astype(jnp.float32), 'kh': kh, 'kw': kw, 'cout': Cout}


def pack_linear(w, b):
    """PyTorch nn.Linear (out,in) -> pre-transposed bf16 (in,out) + f32 bias."""
    return {'w': w.T.astype(jnp.bfloat16), 'shift': b.astype(jnp.float32)}


# --------------------------- conv / linear dispatch -------------------------- #

def conv_pallas(x, pc, stride=(1, 1), padding=(0, 0), slope=None, residual=None):
    """NHWC conv2d via the fused Pallas matmul (BN/bias/activation/residual fused).

    Fast paths (exact for this network's fixed geometry):
      * 1x1 input + odd kernel + pad==k//2  -> center-tap matmul (no im2col, K/9).
      * 1x1 kernel                          -> stride-slice + matmul (no im2col).
    Otherwise im2col via lax.conv_general_dilated_patches (one XLA op)."""
    N, H, W, Cin = x.shape
    kh, kw, Cout = pc['kh'], pc['kw'], pc['cout']
    sh, sw = stride
    ph, pw = padding
    oh = (H + 2 * ph - kh) // sh + 1
    ow = (W + 2 * pw - kw) // sw + 1
    res2 = (residual.reshape(N * oh * ow, Cout).astype(jnp.float32)
            if residual is not None else None)

    if (H == 1 and W == 1 and kh % 2 == 1 and kw % 2 == 1
            and ph == kh // 2 and pw == kw // 2):
        # Only the tap aligned with the single input pixel sees non-zero data.
        a = x.reshape(N, Cin)
        out = fused_matmul(a, pc['w_center'], pc['shift'], residual=res2, slope=slope)
        return out.reshape(N, 1, 1, Cout)

    if kh == 1 and kw == 1 and ph == 0 and pw == 0:
        a = x[:, ::sh, ::sw, :].reshape(N * oh * ow, Cin)
        out = fused_matmul(a, pc['w_full'], pc['shift'], residual=res2, slope=slope)
        return out.reshape(N, oh, ow, Cout)

    patches = jax.lax.conv_general_dilated_patches(
        x, (kh, kw), stride, [(ph, ph), (pw, pw)],
        dimension_numbers=('NHWC', 'HWIO', 'NHWC'))
    _, poh, pow_, Kdim = patches.shape          # feature order = (Cin, kh, kw)
    a = patches.reshape(N * poh * pow_, Kdim)
    out = fused_matmul(a, pc['w_full'], pc['shift'], residual=res2, slope=slope)
    return out.reshape(N, poh, pow_, Cout)


def linear(x, lp, slope=None):
    return fused_matmul(x, lp['w'], lp['shift'], slope=slope)


# ------------------------------- XLA glue ops -------------------------------- #

def leaky(x, s):
    return jnp.where(x > 0, x, s * x)


def avgpool_w(x, k):
    """AvgPool2d(kernel=(1,k), stride=(1,k)), floor mode, NHWC layout."""
    N, H, W, C = x.shape
    Wo = W // k
    return x[:, :, :Wo * k, :].reshape(N, H, Wo, k, C).mean(axis=3)


def maxpool_3x3_s2_p1(x):
    """ResNet stem MaxPool2d(3, stride=2, padding=1) on NHWC (tiny; XLA glue)."""
    return jax.lax.reduce_window(
        x, -jnp.inf, jax.lax.max,
        window_dimensions=(1, 3, 3, 1), window_strides=(1, 2, 2, 1),
        padding=((0, 0), (1, 1), (1, 1), (0, 0)))


# ------------------------------ sub-networks -------------------------------- #

def compress_net_fwd(x, p):
    # x: (B, 8, 440, 1) NHWC.  Cout = 4/8 here -> lane-sparse; keep these tiny
    # convs + pools + BN(12) in XLA per the perf review (masked-vst Pallas loss).
    def conv(inp, w_hwio, b, stride):
        y = jax.lax.conv_general_dilated(
            inp, w_hwio, stride, 'VALID',
            dimension_numbers=('NHWC', 'HWIO', 'NHWC'))
        return y + b
    o11 = leaky(avgpool_w(conv(x, p['c11_w'], p['c11_b'], (1, 1)), 10), 0.15)
    o12 = leaky(avgpool_w(conv(o11, p['c12_w'], p['c12_b'], (1, 1)), 3), 0.15)
    o21 = leaky(avgpool_w(conv(x, p['c21_w'], p['c21_b'], (1, 12)), 4), 0.15)
    cat = jnp.concatenate([o12, o21], axis=-1)          # (B, 8, 8, 12)
    return cat * p['bn_scale'] + p['bn_shift']          # eval BatchNorm2d(12)


def relation_awareness_fwd(feat, p):
    """feat: (B, h, d, n) NHWC == torch 'b n h d' with h=electrodes, d=8, n=12."""
    a1 = p['a'][:8, 0]
    a2 = p['a'][8:, 0]
    h1 = jnp.einsum('bhdn,d->bhn', feat, a1)             # torch: feature @ a[:8]
    h2 = jnp.einsum('bhdn,d->bhn', feat, a2)             # torch: feature @ a[8:]
    e = h1[:, :, None, :] + h2[:, None, :, :]            # (B, h, h, 12) == h1 + h2^T
    # NOTE: the reference module applies NO activation before this BN (spec-faithful).
    return e * p['bn_scale'] + p['bn_shift']             # eval BatchNorm2d(12)


def basic_block_fwd(x, bp):
    B, H, W, Cin = x.shape
    st = bp['stride']

    if H == 1 and W == 1:
        # Fully-reduced geometry: every conv is a plain matmul on (B, Cin).
        a = x.reshape(B, Cin)
        cout = bp['conv2']['cout']
        if bp['down'] is not None:
            # conv1+bn1 and downsample+bn share the same input -> single matmul
            # over the concatenated weight columns; ReLU only on the conv1 half.
            hcat = fused_matmul(a, bp['fused1_w'], bp['fused1_shift'])
            h = jnp.maximum(hcat[:, :cout], 0.0)
            identity = hcat[:, cout:]
        else:
            h = fused_matmul(a, bp['conv1']['w_center'], bp['conv1']['shift'],
                             slope=0.0)
            identity = a
        out = fused_matmul(h, bp['conv2']['w_center'], bp['conv2']['shift'],
                           residual=identity, slope=0.0)
        return out.reshape(B, 1, 1, cout)

    # General path (2x2 / 4x4 feature maps in this network).
    h = conv_pallas(x, bp['conv1'], stride=(st, st), padding=(1, 1), slope=0.0)
    if bp['down'] is not None:
        identity = conv_pallas(x, bp['down'], stride=(st, st), padding=(0, 0))
    else:
        identity = x
    return conv_pallas(h, bp['conv2'], stride=(1, 1), padding=(1, 1),
                       slope=0.0, residual=identity)


def resnet18_fwd(x, p):
    # torchvision resnet18 with conv1: 12->64 and fc: 512->512 (synthesized weights)
    x = conv_pallas(x, p['conv1'], stride=(2, 2), padding=(3, 3), slope=0.0)
    x = maxpool_3x3_s2_p1(x)
    for layer in p['layers']:
        for bp in layer:
            x = basic_block_fwd(x, bp)
    x = jnp.mean(x, axis=(1, 2))          # AdaptiveAvgPool2d((1,1)) + flatten (NHWC)
    return linear(x, p['fc'])


def fc_net_fwd(x, p):
    # TODO(synk): nn.Dropout(0.8) is identity (eval mode); train-mode RNG dropout
    # is not reproduced.  (self.bn is defined but unused in the reference forward.)
    x = linear(x, p['mlp0'], slope=0.1)   # Linear + LeakyReLU(0.1) fused
    return linear(x, p['mlp1'])


def encoder_net_fwd(x_nchw, params):
    x = jnp.transpose(x_nchw, (0, 2, 3, 1))        # single NCHW -> NHWC conversion
    out1 = compress_net_fwd(x, params['compress'])
    out2 = relation_awareness_fwd(out1, params['relation'])
    out3 = resnet18_fwd(out2, params['resnet'])
    return fc_net_fwd(out3, params['fc'])


# ----------------------------- parameter init ------------------------------- #

class ParamGen:
    def __init__(self, seed=0):
        self._key = jax.random.PRNGKey(seed)

    def _next(self):
        self._key, sub = jax.random.split(self._key)
        return sub

    def normal(self, shape, std=0.02):
        return std * jax.random.normal(self._next(), shape, dtype=jnp.float32)

    def conv(self, cout, cin, kh, kw):
        fan_in = cin * kh * kw
        return self.normal((cout, cin, kh, kw), std=math.sqrt(2.0 / fan_in))

    def lin(self, out_f, in_f):
        return (self.normal((out_f, in_f), std=math.sqrt(1.0 / in_f)),
                self.normal((out_f,), std=0.01))

    def bn(self, c):
        # gamma/beta + explicit running statistics (eval-mode BatchNorm).
        return {'gamma': 1.0 + self.normal((c,), 0.01),
                'beta': self.normal((c,), 0.01),
                'mean': jnp.zeros((c,), jnp.float32),
                'var': jnp.ones((c,), jnp.float32)}


def init_params(num_class):
    pg = ParamGen(0)

    # CompressNet: tiny convs stay in XLA -> keep HWIO f32 weights + biases.
    def hwio(w):
        return jnp.transpose(w, (2, 3, 1, 0))
    bn_c = pg.bn(12)
    cs, ct = _bn_affine(bn_c)
    compress = {
        'c11_w': hwio(pg.conv(4, 1, 1, 32)), 'c11_b': pg.normal((4,), 0.01),
        'c12_w': hwio(pg.conv(8, 4, 1, 16)), 'c12_b': pg.normal((8,), 0.01),
        'c21_w': hwio(pg.conv(4, 1, 1, 64)), 'c21_b': pg.normal((4,), 0.01),
        'bn_scale': cs, 'bn_shift': ct,
    }

    bn_r = pg.bn(12)
    rs, rt = _bn_affine(bn_r)
    relation = {'a': pg.normal((16, 1), std=1.414 * math.sqrt(2.0 / 17.0)),
                'bn_scale': rs, 'bn_shift': rt}

    # ResNet18 (conv1: 12->64, fc: 512->512), all weights pre-packed + BN folded.
    resnet = {'conv1': pack_conv(pg.conv(64, 12, 7, 7), bn=pg.bn(64))}
    cfg = [(64, 64, 1), (64, 128, 2), (128, 256, 2), (256, 512, 2)]
    layers = []
    for cin, cout, stride in cfg:
        blocks = []
        for bi in range(2):
            in_c = cin if bi == 0 else cout
            st = stride if bi == 0 else 1
            conv1 = pack_conv(pg.conv(cout, in_c, 3, 3), bn=pg.bn(cout))
            conv2 = pack_conv(pg.conv(cout, cout, 3, 3), bn=pg.bn(cout))
            bp = {'stride': st, 'conv1': conv1, 'conv2': conv2}
            if st != 1 or in_c != cout:
                down = pack_conv(pg.conv(cout, in_c, 1, 1), bn=pg.bn(cout))
                bp['down'] = down
                # Pre-packed fused (conv1 center-tap | downsample) weight for the
                # 1x1-geometry path: one matmul instead of two.
                bp['fused1_w'] = jnp.concatenate(
                    [conv1['w_center'], down['w_center']], axis=1)
                bp['fused1_shift'] = jnp.concatenate(
                    [conv1['shift'], down['shift']])
            else:
                bp['down'] = None
            blocks.append(bp)
        layers.append(blocks)
    resnet['layers'] = layers
    fw, fb = pg.lin(512, 512)
    resnet['fc'] = pack_linear(fw, fb)

    w0, b0 = pg.lin(128, 512)
    w1, b1 = pg.lin(num_class, 128)
    fc = {'mlp0': pack_linear(w0, b0), 'mlp1': pack_linear(w1, b1)}

    return {'compress': compress, 'relation': relation, 'resnet': resnet, 'fc': fc}


# ---------------------------------- main ------------------------------------ #

if __name__ == "__main__":
    # --- one-off correctness checks for the two Pallas conv paths -----------
    # (a) im2col patch feature ordering, (b) 1x1-geometry center-tap reduction,
    # both vs. lax.conv_general_dilated with the same bf16-rounded operands.
    def _conv_ref(xt, wt, stride, pad):
        w_hwio = jnp.transpose(wt, (2, 3, 1, 0))
        return jax.lax.conv_general_dilated(
            xt.astype(jnp.bfloat16).astype(jnp.float32),
            w_hwio.astype(jnp.bfloat16).astype(jnp.float32),
            stride, [(pad[0], pad[0]), (pad[1], pad[1])],
            dimension_numbers=('NHWC', 'HWIO', 'NHWC'))

    kx, kw_ = jax.random.split(jax.random.PRNGKey(1))
    for xs, ws, stride, pad in [((2, 8, 8, 12), (16, 12, 3, 3), (1, 1), (1, 1)),
                                ((2, 1, 1, 64), (32, 64, 3, 3), (2, 2), (1, 1))]:
        xt = jax.random.normal(kx, xs, dtype=jnp.float32)
        wt = 0.05 * jax.random.normal(kw_, ws, dtype=jnp.float32)
        got = conv_pallas(xt, pack_conv(wt), stride=stride, padding=pad)
        want = _conv_ref(xt, wt, stride, pad)
        assert got.shape == want.shape, (got.shape, want.shape)
        assert bool(jnp.allclose(got, want, atol=3e-2, rtol=3e-2)), \
            float(jnp.max(jnp.abs(got - want)))

    # --- the actual EncoderNet forward ---------------------------------------
    num_class = 4
    params = init_params(num_class)

    # EEG-like input: batch=8, 1 channel, 8 electrodes, 440 time samples.
    # Width 440 is dictated by the CompressNet conv/pool geometry: both branches
    # must compress time down to width 8 == RelationAwareness.expand_size.
    # Larger batches are the main performance lever (raises matmul M).
    x = jax.random.normal(jax.random.PRNGKey(0), (8, 1, 8, 440), dtype=jnp.float32)

    fwd = jax.jit(lambda inp: encoder_net_fwd(inp, params))
    out = jax.block_until_ready(fwd(x))

    assert out.shape == (8, num_class), out.shape
    assert bool(jnp.all(jnp.isfinite(out)))
    print("KERNEL_OK")
</pallas_src>

<mosaic_0001>
module attributes {stable_mosaic.version = 11 : i64} {
  func.func @_mm_kernel(%arg0: memref<128x108xbf16, #tpu.memory_space<vmem>>, %arg1: memref<108x16xbf16, #tpu.memory_space<vmem>>, %arg2: memref<1x16xf32, #tpu.memory_space<vmem>>, %arg3: memref<128x16xf32, #tpu.memory_space<vmem>>) attributes {dimension_semantics = [], scalar_prefetch = 0 : i64, scratch_operands = 0 : i64, tpu.core_type = #tpu.core_type<tc>} {
    %c0 = arith.constant 0 : index
    %c0_0 = arith.constant 0 : index
    %0 = vector.load %arg0[%c0, %c0_0] : memref<128x108xbf16, #tpu.memory_space<vmem>>, vector<128x108xbf16>
    %c0_1 = arith.constant 0 : index
    %c0_2 = arith.constant 0 : index
    %1 = vector.load %arg1[%c0_1, %c0_2] : memref<108x16xbf16, #tpu.memory_space<vmem>>, vector<108x16xbf16>
    %cst = arith.constant dense<0.000000e+00> : vector<128x16xf32>
    %2 = tpu.matmul %0, %1, %cst {dimension_numbers = #tpu.dot_dimension_numbers<[1], [0], [0], [1], [0, 0, 1, 1], [], []>} : vector<128x108xbf16>, vector<108x16xbf16>, vector<128x16xf32> -> vector<128x16xf32>
    %c0_3 = arith.constant 0 : index
    %c0_4 = arith.constant 0 : index
    %3 = vector.load %arg2[%c0_3, %c0_4] : memref<1x16xf32, #tpu.memory_space<vmem>>, vector<1x16xf32>
    %4 = vector.broadcast %3 : vector<1x16xf32> to vector<128x16xf32>
    %5 = arith.addf %2, %4 : vector<128x16xf32>
    %c0_5 = arith.constant 0 : index
    %c0_6 = arith.constant 0 : index
    %6 = vector.load %arg3[%c0_5, %c0_6] : memref<128x16xf32, #tpu.memory_space<vmem>>, vector<128x16xf32>
    tpu.vector_store %arg3[%c0_5, %c0_6], %5 {strides = array<i32>} : memref<128x16xf32, #tpu.memory_space<vmem>>, vector<128x16xf32>,
    return
  }
}

</mosaic_0001>

<bundles_post_ra>
// kernel: tpu_custom_call.1
= control target key start
LH: loop header
LB: loop body
LE: loop exit
PB: predicated region body
PF: predicated region fallthrough
CT: control target
= control target key end

     0   :  { %vm155_vm0 = vcmask 1045504   ;;  %vm130_vm1 = vcmask 883712   ;;  %vm208_vm2 = vcmask 130048   ;;  %s477_s1 = inlined_call_operand.vmem [shape: bf16[108,16], index: 1, kind: input, shape index: {}]   ;;  %s478_s2 = inlined_call_operand.vmem [shape: f32[1,16], index: 2, kind: input, shape index: {}]   ;;  %s479_s0 = inlined_call_operand.vmem [shape: bf16[128,108], index: 0, kind: input, shape index: {}]   ;;  %s480_s3 = inlined_call_operand.vmem [shape: f32[128,16], index: 3, kind: output, shape index: {}]  }
   0x1   :  { %v287_v0 = vld [vmem:[%s477_s1 + $0x30] sm:$0xf]  ;;  %v311_v1 = vld [vmem:[%s477_s1 + $0x30] sm:$0x30]  ;;  %v310_v4 = vld [vmem:[%s477_s1 + $0x28] sm:$0xff] }
   0x2   :  { %v288_v2 = vor.u32 %v311_v1, %v287_v0  ;;  %v309_v5 = vld [vmem:[%s477_s1 + $0x20] sm:$0xff]  ;;  %v308_v6 = vld [vmem:[%s477_s1 + $0x18] sm:$0xff]  ;;  %v307_v7 = vld [vmem:[%s477_s1 + $0x10] sm:$0xff] }
   0x3   :  { %v306_v8 = vld [vmem:[%s477_s1 + $0x8] sm:$0xff]  ;;  %v305_v9 = vld [vmem:[%s477_s1] sm:$0xff]  ;;  %v299_v11 = vld [vmem:[%s479_s0 + $0x10] sm:$0xff] }
   0x4   :  { %v157_v3 = vsel %vm155_vm0, %v288_v2, 0  ;;  %v297_v10 = vld [vmem:[%s479_s0] sm:$0xff]  ;;  %v303_v13 = vld [vmem:[%s479_s0 + $0x30] sm:$0xff]  ;;  %v298_v14 = vld [vmem:[%s479_s0 + $0x8] sm:$0xff] }
   0x5   :  { %160 = vmatpush.bf16.msra.mxu0 %v157_v3  ;;  %312 = vmatpush.bf16.msra.mxu1 %v157_v3  ;;  %v301_v12 = vld [vmem:[%s479_s0 + $0x20] sm:$0xff]  ;;  %v300_v15 = vld [vmem:[%s479_s0 + $0x18] sm:$0xff]  ;;  %v302_v16 = vld [vmem:[%s479_s0 + $0x28] sm:$0xff] }
   0x6   :  { %313 = vmatpush.bf16.msra.mxu2 %v157_v3  ;;  %314 = vmatpush.bf16.msra.mxu3 %v157_v3  ;;  %v304_v17 = vld [vmem:[%s479_s0 + $0x38] sm:$0xff]  ;;  %v333_v18 = vld [vmem:[%s478_s2] ss:$0 sm:$0xff] }
   0x9   :  { %161 = vmatpush.bf16.msra.mxu0 %v310_v4  ;;  %315 = vmatpush.bf16.msra.mxu1 %v310_v4 }
   0xa   :  { %316 = vmatpush.bf16.msra.mxu2 %v310_v4  ;;  %317 = vmatpush.bf16.msra.mxu3 %v310_v4 }
   0xd   :  { %162 = vmatpush.bf16.msra.mxu0 %v309_v5  ;;  %318 = vmatpush.bf16.msra.mxu1 %v309_v5 }
   0xe   :  { %319 = vmatpush.bf16.msra.mxu2 %v309_v5  ;;  %320 = vmatpush.bf16.msra.mxu3 %v309_v5 }
  0x11   :  { %163 = vmatpush.bf16.msra.mxu0 %v308_v6  ;;  %321 = vmatpush.bf16.msra.mxu1 %v308_v6 }
  0x12   :  { %322 = vmatpush.bf16.msra.mxu2 %v308_v6  ;;  %323 = vmatpush.bf16.msra.mxu3 %v308_v6 }
  0x15   :  { %164 = vmatpush.bf16.msra.mxu0 %v307_v7  ;;  %324 = vmatpush.bf16.msra.mxu1 %v307_v7 }
  0x16   :  { %325 = vmatpush.bf16.msra.mxu2 %v307_v7  ;;  %326 = vmatpush.bf16.msra.mxu3 %v307_v7 }
  0x19   :  { %165 = vmatpush.bf16.msra.mxu0 %v306_v8  ;;  %327 = vmatpush.bf16.msra.mxu1 %v306_v8 }
  0x1a   :  { %328 = vmatpush.bf16.msra.mxu2 %v306_v8  ;;  %329 = vmatpush.bf16.msra.mxu3 %v306_v8 }
  0x1d   :  { %166 = vmatpush.bf16.msra.mxu0 %v305_v9  ;;  %330 = vmatpush.bf16.msra.mxu1 %v305_v9 }
  0x1e   :  { %331 = vmatpush.bf16.msra.mxu2 %v305_v9  ;;  %332 = vmatpush.bf16.msra.mxu3 %v305_v9 }
  0x20   :  { %289 = vmatmul.msk.bf16.vlgmr.msra.gmra.mxu0 %vm130_vm1, %v297_v10  ;;  %291 = vmatmul.msk.bf16.vlgmr.msra.gmra.mxu1 %vm130_vm1, %v299_v11 }
  0x21   :  { %293 = vmatmul.msk.bf16.vlgmr.msra.gmra.mxu2 %vm130_vm1, %v301_v12  ;;  %295 = vmatmul.msk.bf16.vlgmr.msra.gmra.mxu3 %vm130_vm1, %v303_v13 }
  0x30   :  { %290 = vmatmul.msk.bf16.gmra.mxu0 %vm130_vm1, %v298_v14  ;;  %292 = vmatmul.msk.bf16.gmra.mxu1 %vm130_vm1, %v300_v15 }
  0x31   :  { %294 = vmatmul.msk.bf16.gmra.mxu2 %vm130_vm1, %v302_v16  ;;  %296 = vmatmul.msk.bf16.gmra.mxu3 %vm130_vm1, %v304_v17 }
  0x9d   :  { %v168_v19 = vpop.f32.mrf.mxu0  ;;  %v178_v20 = vpop.f32.mrf.mxu1 }
  0x9e   :  { %v169_v21 = vadd.f32 %v333_v18, %v168_v19  ;;  %v179_v22 = vadd.f32 %v333_v18, %v178_v20 }
  0xa0   :  { %209 = vst.msk [vmem:[%s480_s3] sm:$0xff] %vm208_vm2, %v169_v21 }
  0xa1   :  { %213 = vst.msk [vmem:[%s480_s3 + $0x20] sm:$0xff] %vm208_vm2, %v179_v22 }
  0xa4   :  { %v188_v23 = vpop.f32.mrf.mxu2  ;;  %v198_v24 = vpop.f32.mrf.mxu3 }
  0xa5   :  { %v189_v25 = vadd.f32 %v333_v18, %v188_v23  ;;  %v199_v26 = vadd.f32 %v333_v18, %v198_v24  ;;  %v170_v27 = vpop.f32.mrf.mxu0  ;;  %v180_v28 = vpop.f32.mrf.mxu1 }
  0xa6   :  { %v171_v29 = vadd.f32 %v333_v18, %v170_v27  ;;  %v181_v30 = vadd.f32 %v333_v18, %v180_v28 }
  0xa7   :  { %217 = vst.msk [vmem:[%s480_s3 + $0x40] sm:$0xff] %vm208_vm2, %v189_v25 }
  0xa8   :  { %221 = vst.msk [vmem:[%s480_s3 + $0x60] sm:$0xff] %vm208_vm2, %v199_v26 }
  0xa9   :  { %210 = vst.msk [vmem:[%s480_s3 + $0x8] sm:$0xff] %vm208_vm2, %v171_v29 }
  0xaa   :  { %214 = vst.msk [vmem:[%s480_s3 + $0x28] sm:$0xff] %vm208_vm2, %v181_v30 }
  0xac   :  { %v190_v31 = vpop.f32.mrf.mxu2  ;;  %v200_v32 = vpop.f32.mrf.mxu3 }
  0xad   :  { %v191_v33 = vadd.f32 %v333_v18, %v190_v31  ;;  %v201_v34 = vadd.f32 %v333_v18, %v200_v32  ;;  %v173_v35 = vpop.f32.mrf.mxu0  ;;  %v183_v36 = vpop.f32.mrf.mxu1 }
  0xae   :  { %v174_v37 = vadd.f32 %v333_v18, %v173_v35  ;;  %v184_v38 = vadd.f32 %v333_v18, %v183_v36 }
  0xaf   :  { %218 = vst.msk [vmem:[%s480_s3 + $0x48] sm:$0xff] %vm208_vm2, %v191_v33 }
  0xb0   :  { %222 = vst.msk [vmem:[%s480_s3 + $0x68] sm:$0xff] %vm208_vm2, %v201_v34 }
  0xb1   :  { %211 = vst.msk [vmem:[%s480_s3 + $0x10] sm:$0xff] %vm208_vm2, %v174_v37 }
  0xb2   :  { %215 = vst.msk [vmem:[%s480_s3 + $0x30] sm:$0xff] %vm208_vm2, %v184_v38 }
  0xb4   :  { %v193_v39 = vpop.f32.mrf.mxu2  ;;  %v203_v40 = vpop.f32.mrf.mxu3 }
  0xb5   :  { %v194_v41 = vadd.f32 %v333_v18, %v193_v39  ;;  %v204_v42 = vadd.f32 %v333_v18, %v203_v40  ;;  %v175_v43 = vpop.f32.mrf.mxu0  ;;  %v185_v44 = vpop.f32.mrf.mxu1 }
  0xb6   :  { %v176_v45 = vadd.f32 %v333_v18, %v175_v43  ;;  %v186_v46 = vadd.f32 %v333_v18, %v185_v44 }
  0xb7   :  { %219 = vst.msk [vmem:[%s480_s3 + $0x50] sm:$0xff] %vm208_vm2, %v194_v41 }
  0xb8   :  { %223 = vst.msk [vmem:[%s480_s3 + $0x70] sm:$0xff] %vm208_vm2, %v204_v42 }
  0xb9   :  { %212 = vst.msk [vmem:[%s480_s3 + $0x18] sm:$0xff] %vm208_vm2, %v176_v45 }
  0xba   :  { %216 = vst.msk [vmem:[%s480_s3 + $0x38] sm:$0xff] %vm208_vm2, %v186_v46 }
  0xbc   :  { %v195_v47 = vpop.f32.mrf.mxu2  ;;  %v205_v48 = vpop.f32.mrf.mxu3 }
  0xbd   :  { %v196_v49 = vadd.f32 %v333_v18, %v195_v47  ;;  %v206_v50 = vadd.f32 %v333_v18, %v205_v48 }
  0xbf   :  { %220 = vst.msk [vmem:[%s480_s3 + $0x58] sm:$0xff] %vm208_vm2, %v196_v49 }
  0xc0   :  { %224 = vst.msk [vmem:[%s480_s3 + $0x78] sm:$0xff] %vm208_vm2, %v206_v50 }

</bundles_post_ra>
